<compile_context>
chip_gen: v5e
topology: v5e:2x2
jax: 0.10.0
libtpu: 0.0.40
codegen_flags: <defaults>
</compile_context>

<pallas_src>
import numpy as np
import jax
import jax.numpy as jnp
from jax.experimental import pallas as pl
from jax.experimental.pallas import tpu as pltpu


def _round_up(a: int, b: int) -> int:
    return ((a + b - 1) // b) * b


def _masking_kernel(x_ref, sel_ref, o_ref, acc_ref):
    """(tb, tn) @ (tn, tk) one-hot -> accumulate into (tb, tk) == x[:, mask] tile."""
    n_step = pl.program_id(2)

    @pl.when(n_step == 0)
    def _init():
        acc_ref[...] = jnp.zeros_like(acc_ref)

    x = x_ref[...]
    sel = sel_ref[...]
    if x.dtype == jnp.bfloat16:
        # Native bf16 x bf16 MXU path, exact for a 0/1 selection, f32 accumulate.
        acc_ref[...] += jnp.dot(x, sel, preferred_element_type=jnp.float32)
    else:
        # Widen the bf16 one-hot once per tile (0/1 exact); keep x / acc in f32.
        # (Also routes integer inputs through the float MXU path.)
        acc_ref[...] += jnp.dot(
            x.astype(jnp.float32),
            sel.astype(jnp.float32),
            preferred_element_type=jnp.float32,
        )

    @pl.when(n_step == pl.num_programs(2) - 1)
    def _finalize():
        o_ref[...] = acc_ref[...].astype(o_ref.dtype)


class ImageNetXMaskingLayer:
    """Pallas port of the PyTorch module: forward(x) = x[:, mask]."""

    def __init__(self, mask):
        mask = np.asarray(mask)
        if mask.dtype == np.bool_:  # boolean mask -> index form
            mask = np.nonzero(mask)[0]
        self.mask = mask.astype(np.int64).reshape(-1)
        self._sel_cache = {}
        # TODO(synk): when this layer follows an FC head, fold the mask into the
        # classifier weights (W[:, mask], b[mask]) at init and drop this op from
        # the hot path entirely.

    def _selection_matrix(self, n_pad: int, k_pad: int):
        key = (int(n_pad), int(k_pad))
        if key not in self._sel_cache:
            k = int(self.mask.shape[0])
            sel = np.zeros((n_pad, k_pad), dtype=np.float32)
            sel[self.mask, np.arange(k)] = 1.0
            # 0.0 / 1.0 are exact in bf16 -> halves the dominant HBM stream.
            self._sel_cache[key] = jnp.asarray(sel, dtype=jnp.bfloat16)
        return self._sel_cache[key]

    def __call__(self, x):
        B, N = x.shape
        K = int(self.mask.shape[0])
        out_dtype = x.dtype

        # ---- tile sizes -----------------------------------------------------
        itemsize = jnp.dtype(x.dtype).itemsize
        min_tb = max(8, 32 // max(itemsize, 1))      # f32: 8, bf16: 16, int8/fp8: 32
        tb = min(512, _round_up(B, min_tb))          # largest reasonable batch tile
        b_pad = _round_up(B, tb)

        k_pad = _round_up(max(K, 1), 128)            # lane-dense output blocks
        tk = 128 if k_pad >= 256 else k_pad          # >=2 K tiles -> megacore-splittable

        if N <= 4096:                                # keep the class axis resident
            tn, n_pad = N, N
        else:                                        # huge label space: tile reduction
            tn = 2048
            n_pad = _round_up(N, tn)

        nb, nk, nn = b_pad // tb, k_pad // tk, n_pad // tn

        sel = self._selection_matrix(n_pad, k_pad)

        if (b_pad, n_pad) != (B, N):
            x = jnp.pad(x, ((0, b_pad - B), (0, n_pad - N)))

        # S block index is constant across the grid -> single-buffer it to save
        # a second N*K VMEM buffer (matters for 21k-class variants on v7x).
        if nk == 1 and nn == 1:
            sel_spec = pl.BlockSpec(
                (tn, tk), lambda i, j, n: (n, j), pipeline_mode=pl.Buffered(1)
            )
        else:
            sel_spec = pl.BlockSpec((tn, tk), lambda i, j, n: (n, j))

        out = pl.pallas_call(
            _masking_kernel,
            out_shape=jax.ShapeDtypeStruct((b_pad, k_pad), out_dtype),
            grid=(nb, nk, nn),
            in_specs=[
                pl.BlockSpec((tb, tn), lambda i, j, n: (i, n)),   # logits tile
                sel_spec,                                         # one-hot selection
            ],
            out_specs=pl.BlockSpec((tb, tk), lambda i, j, n: (i, j)),
            scratch_shapes=[pltpu.VMEM((tb, tk), jnp.float32)],   # f32 accumulator
            compiler_params=pltpu.CompilerParams(
                dimension_semantics=("parallel", "parallel", "arbitrary"),
            ),
            cost_estimate=pl.CostEstimate(
                flops=2 * b_pad * n_pad * k_pad,
                transcendentals=0,
                bytes_accessed=int(x.nbytes)
                + int(sel.nbytes)
                + b_pad * k_pad * jnp.dtype(out_dtype).itemsize,
            ),
        )(x, sel)

        return out[:B, :K]


if __name__ == "__main__":
    key = jax.random.PRNGKey(0)
    kmask, kx = jax.random.split(key)

    batch, num_classes, num_kept = 2, 1000, 200  # ImageNet-R-style: keep 200 of 1000
    mask = np.sort(np.asarray(jax.random.permutation(kmask, num_classes))[:num_kept])

    layer = ImageNetXMaskingLayer(mask)
    x = jax.random.normal(kx, (batch, num_classes), dtype=jnp.float32)

    out = jax.block_until_ready(layer(x))

    ref = x[:, mask]  # plain-JAX reference of the PyTorch forward
    assert out.shape == (batch, num_kept) and out.dtype == jnp.float32
    assert jnp.allclose(out, ref, atol=1e-3, rtol=1e-3), float(jnp.max(jnp.abs(out - ref)))
    print("KERNEL_OK")
</pallas_src>

<mosaic_0001>
module attributes {stable_mosaic.version = 11 : i64} {
  func.func @_masking_kernel(%arg0: i32, %arg1: i32, %arg2: i32, %arg3: memref<8x1000xf32, #tpu.memory_space<vmem>>, %arg4: memref<1000x128xbf16, #tpu.memory_space<vmem>>, %arg5: memref<8x128xf32, #tpu.memory_space<vmem>>, %arg6: memref<8x128xf32, #tpu.memory_space<vmem>>) attributes {dimension_semantics = [#tpu.dimension_semantics<parallel>, #tpu.dimension_semantics<parallel>, #tpu.dimension_semantics<arbitrary>], iteration_bounds = array<i64: 1, 2, 1>, scalar_prefetch = 0 : i64, scratch_operands = 1 : i64, tpu.core_type = #tpu.core_type<tc>, window_params = [{transform_indices = @transform_0, window_bounds = array<i64: 8, 1000>}, {transform_indices = @transform_1, window_bounds = array<i64: 1000, 128>}, {transform_indices = @transform_2, window_bounds = array<i64: 8, 128>}]} {
    %c0_i32 = arith.constant 0 : i32
    %0 = arith.cmpi eq, %arg2, %c0_i32 : i32
    %1 = arith.extui %0 : i1 to i32
    %c0_i32_0 = arith.constant 0 : i32
    %2 = arith.cmpi ne, %1, %c0_i32_0 : i32
    scf.if %2 {
      %cst_10 = arith.constant 0.000000e+00 : f32
      %13 = vector.broadcast %cst_10 : f32 to vector<8x128xf32>
      %c0_11 = arith.constant 0 : index
      %c0_12 = arith.constant 0 : index
      %14 = vector.load %arg6[%c0_11, %c0_12] : memref<8x128xf32, #tpu.memory_space<vmem>>, vector<8x128xf32>
      tpu.vector_store %arg6[%c0_11, %c0_12], %13 {strides = array<i32>} : memref<8x128xf32, #tpu.memory_space<vmem>>, vector<8x128xf32>,
    } else {
    }
    %c0 = arith.constant 0 : index
    %c0_1 = arith.constant 0 : index
    %3 = vector.load %arg3[%c0, %c0_1] : memref<8x1000xf32, #tpu.memory_space<vmem>>, vector<8x1000xf32>
    %c0_2 = arith.constant 0 : index
    %c0_3 = arith.constant 0 : index
    %4 = vector.load %arg4[%c0_2, %c0_3] : memref<1000x128xbf16, #tpu.memory_space<vmem>>, vector<1000x128xbf16>
    %c0_4 = arith.constant 0 : index
    %c0_5 = arith.constant 0 : index
    %5 = vector.load %arg6[%c0_4, %c0_5] : memref<8x128xf32, #tpu.memory_space<vmem>>, vector<8x128xf32>
    %6 = arith.extf %4 : vector<1000x128xbf16> to vector<1000x128xf32>
    %cst = arith.constant dense<0.000000e+00> : vector<8x128xf32>
    %7 = tpu.matmul %3, %6, %cst {dimension_numbers = #tpu.dot_dimension_numbers<[1], [0], [0], [1], [0, 0, 1, 1], [], []>} : vector<8x1000xf32>, vector<1000x128xf32>, vector<8x128xf32> -> vector<8x128xf32>
    %8 = arith.addf %5, %7 : vector<8x128xf32>
    %c0_6 = arith.constant 0 : index
    %c0_7 = arith.constant 0 : index
    %9 = vector.load %arg6[%c0_6, %c0_7] : memref<8x128xf32, #tpu.memory_space<vmem>>, vector<8x128xf32>
    tpu.vector_store %arg6[%c0_6, %c0_7], %8 {strides = array<i32>} : memref<8x128xf32, #tpu.memory_space<vmem>>, vector<8x128xf32>,
    %c0_i32_8 = arith.constant 0 : i32
    %10 = arith.cmpi eq, %arg2, %c0_i32_8 : i32
    %11 = arith.extui %10 : i1 to i32
    %c0_i32_9 = arith.constant 0 : i32
    %12 = arith.cmpi ne, %11, %c0_i32_9 : i32
    scf.if %12 {
      %c0_10 = arith.constant 0 : index
      %c0_11 = arith.constant 0 : index
      %13 = vector.load %arg6[%c0_10, %c0_11] : memref<8x128xf32, #tpu.memory_space<vmem>>, vector<8x128xf32>
      %c0_12 = arith.constant 0 : index
      %c0_13 = arith.constant 0 : index
      %14 = vector.load %arg5[%c0_12, %c0_13] : memref<8x128xf32, #tpu.memory_space<vmem>>, vector<8x128xf32>
      tpu.vector_store %arg5[%c0_12, %c0_13], %13 {strides = array<i32>} : memref<8x128xf32, #tpu.memory_space<vmem>>, vector<8x128xf32>,
    } else {
    }
    return
  }
  func.func @transform_0(%arg0: i32, %arg1: i32, %arg2: i32) -> (i32, i32) {
    %c0_i32 = arith.constant 0 : i32
    return %arg0, %arg2 : i32, i32
  }
  func.func @transform_1(%arg0: i32, %arg1: i32, %arg2: i32) -> (i32, i32) {
    %c0_i32 = arith.constant 0 : i32
    return %arg2, %arg1 : i32, i32
  }
  func.func @transform_2(%arg0: i32, %arg1: i32, %arg2: i32) -> (i32, i32) {
    %c0_i32 = arith.constant 0 : i32
    return %arg0, %arg1 : i32, i32
  }
}

</mosaic_0001>

<bundles_post_ra>
// kernel: tpu_custom_call.1
= control target key start
LH: loop header
LB: loop body
LE: loop exit
PB: predicated region body
PF: predicated region fallthrough
CT: control target
= control target key end

     0   :  { %s1562_s0 = inlined_call_operand.hbm [shape: f32[8,1000], index: 0, kind: input, shape index: {}]   ;;  %s1563_s1 = inlined_call_operand.hbm [shape: bf16[1000,256], index: 1, kind: input, shape index: {}]   ;;  %s1564_s2 = inlined_call_operand.hbm [shape: f32[8,256], index: 2, kind: output, shape index: {}]  }
   0x1   :  { %1565 = sst [smem:[#allocation12_spill]] %s1562_s0 }
   0x2   :  { %7 = vsyncpa [#allocation4], 0 }
   0x3   :  { %8 = vsyncpa [#allocation7], 0 }
   0x4   :  { %10 = vsyncpa [#allocation7 + $0x1], 0 }
   0x5   :  { %11 = vsyncpa [#allocation5], 0 }
   0x6   :  { %13 = vsyncpa [#allocation5 + $0x1], 0  ;;  %s1341_s9 = smov 0   ;;  %s1343_s10 = smov 0  }
   0x7   :  { %s1345_s11 = smov 0   ;;  %s1347_s12 = smov 0  }
   0x8   :  { %s1349_s13 = smov 0   ;;  %s1351_s14 = smov 0  }
   0x9 LB: > { %s773_s15 = sadd.s32 4294967295, %s1320_s14   ;;  %s774_s16 = sadd.s32 4294967294, %s1320_s14   ;;  %s1320_s14 = sphi %s1351_s14, %s19_s14   ;;  %s1316_s13 = sphi %s1349_s13, %s1578_s13   ;;  %s1312_s12 = sphi %s1347_s12, %s1577_s12   ;;  %s1308_s11 = sphi %s1345_s11, %s1576_s11   ;;  %s1304_s10 = sphi %s1343_s10, %s1575_s10   ;;  %s1300_s9 = sphi %s1341_s9, %s1574_s9  }
   0xa   : > { %s75_s17 = sadd.s32 1, %s1308_s11  ;;  %p82_p0 = scmp.ne.s32.totalorder %s1308_s11, %s1304_s10 }
   0xb   : > { %p83_p1 = scmp.eq.s32.totalorder %s1320_s14, 0  ;;  %p88_p2 = scmp.ne.s32.totalorder %s1304_s10, %s1300_s9 }
   0xc   : > { %p1379_p3 = scmp.eq.s32.totalorder %s773_s15, 0  ;;  %p114_p4 = scmp.eq.s32.totalorder %s773_s15, 1 }
   0xd   : > { %p1383_p5 = por %p83_p1, %p82_p0  ;;  %p120_p6 = scmp.eq.s32.totalorder %s774_s16, 1 }
   0xe   : > { %p1389_p7 = por %p1379_p3, %p88_p2  ;;  %p1393_p8 = por %p114_p4, %p82_p0 }
   0xf   : > { %p1397_p9 = por %p120_p6, %p88_p2  ;;  %p775_p10 = scmp.ge.s32.totalorder %s1320_s14, 1 }
  0x10   : > { %p127_p11 = scmp.lt.s32.totalorder %s1320_s14, 3  ;;  %s1571_s0 = sld [smem:[#allocation12_spill]] }
  0x11   : > { %s1322_s27 = smov [#allocation3]   ;;  %p777_p13 = scmp.ge.s32.totalorder %s1320_s14, 2 }
  0x12   : > { %p1406_p12 = pnand %p775_p10, %p127_p11  ;;  %s146_s28 = sshll.u32 %s1322_s27, 4  ;;  %s147_s28 = int_to_ptr.vmem [resolvable:$true] %s146_s28 }
  0x13   : > { %p1119_p1 = scmp.lt.s32.totalorder %s1320_s14, 2  ;;  %s34_s30 = sadd.s32 1, %s1316_s13 }
  0x14   : > { %p1106_p0 = pneg %p1406_p12  ;;  %p36_p6 = scmp.ge.s32.totalorder %s34_s30, 2 }
  0x15   : > { %p1418_p4 = pnand %p1119_p1, %p1383_p5  ;;  %s157_s3 = sand.u32 1, %s1308_s11  }
  0x16   : > { %s144_s25 = sshll.u32 %s1571_s0, 4  ;;  %p1107_p2 = pnand %p1106_p0, %p1379_p3  ;;  %s145_s25 = int_to_ptr.hbm [resolvable:$true] %s144_s25 }
  0x17   : > { %s1580_s30 = smov (%p36_p6, %s34_s30), 0  ;;  %s1096_s4 = smul.u32 500, %s157_s3 }
  0x18   : > { %1109 = dma.hbm_to_vmem [thread:$0]  (!%p1107_p2), %s145_s25, 1024, %s147_s28, [#allocation4]  }
  0x19   : > { %s71_s5 = ssub.s32 %s1316_s13, %s1580_s30  ;;  %s778_s6 = sshll.u32 %s1316_s13, 2 }
  0x1a   : > { %p73_p10 = scmp.eq.s32.totalorder %s71_s5, 0  ;;  %s168_s15 = scalar_lea.hbm %s1563_s1, %s778_s6 }
  0x1b   : > { %s161_s16 = scalar_lea.vmem [#allocation6], %s1096_s4  ;;  %s169_s24 = sshll.u32 %s168_s15, 4  ;;  %s170_s24 = int_to_ptr.hbm [resolvable:$true] %s169_s24 }
  0x1c   : > { %s171_s19 = sshll.u32 %s161_s16, 4  ;;  %s158_s25 = scalar_lea.sflag [#allocation7], %s157_s3  ;;  %s172_s19 = int_to_ptr.vmem [resolvable:$true] %s171_s19 }
  0x1d   : > { %s1435_s23 = scalar_select %p73_p10, %s1308_s11, %s75_s17  }
  0x1e   : > { %s1323_s27 = smov 128   ;;  %s1324_s28 = smov 64  }
  0x1f   : > { %s1325_s0 = smov 4   ;;  %183 = sbr.rel (%p1406_p12) target bundleno = 249 (0xf9), region = 28 }
  0x20   : > { %1113 = dma.hbm_to_vmem [thread:$0]  (!%p1418_p4), %s170_s24, 8000, %s172_s19, %s158_s25, %s1323_s27, %s1324_s28, %s1325_s0  }
  0x24   : > { %1287 = dma.done.wait (%p1379_p3), [#allocation4], 1024  }
  0x25   : > { %1289 = vsyncadd (%p1379_p3), [#allocation4], 4294966272  ;;  %s1446_s17 = sand.u32 1, %s1304_s10  }
  0x26   : > { %s1097_s3 = smul.u32 500, %s1446_s17  ;;  %s191_s4 = scalar_lea.sflag [#allocation7], %s1446_s17 }
  0x28   : > { %s1450_s5 = scalar_lea.vmem [#allocation6], %s1097_s3 }
  0x29   : > { %1291 = dma.done.wait (%p1389_p7), %s191_s4, 8000  }
  0x2a   : > { %1293 = vsyncadd (%p1389_p7), %s191_s4, 4294959296  ;;  %v1041_v0 = vld [vmem:[%s1450_s5 + $0x38] sm:$0xff]   ;;  %v1040_v7 = vld [vmem:[%s1450_s5 + $0x30] sm:$0xff]   ;;  %vm482_vm0 = vcmask 850944   ;;  %s781_s0 = sshll.u32 %s1446_s17, 3  ;;  %s784_s18 = sshll.u32 %s1312_s12, 3 }
  0x2b   : > { %v1057_v1 = vld [vmem:[%s1450_s5 + $0xb8] sm:$0xff]   ;;  %v818_v3 = vunpack.c.h.bf16 %v1041_v0  ;;  %v817_v5 = vunpack.c.l.bf16 %v1041_v0  ;;  %v1056_v8 = vld [vmem:[%s1450_s5 + $0xb0] sm:$0xff]   ;;  %v814_v13 = vunpack.c.h.bf16 %v1040_v7  ;;  %v1039_v16 = vld [vmem:[%s1450_s5 + $0x28] sm:$0xff]   ;;  %v813_v20 = vunpack.c.l.bf16 %v1040_v7  ;;  %s666_s29 = scalar_lea.hbm %s1564_s2, %s784_s18  ;;  %s215_s6 = scalar_lea.vmem [#allocation8], %s781_s0 }
  0x2c   : > { %v1049_v2 = vld [vmem:[%s1450_s5 + $0x78] sm:$0xff]   ;;  %v882_v4 = vunpack.c.h.bf16 %v1057_v1  ;;  %v1048_v9 = vld [vmem:[%s1450_s5 + $0x70] sm:$0xff]   ;;  %v881_v10 = vunpack.c.l.bf16 %v1057_v1  ;;  %v878_v14 = vunpack.c.h.bf16 %v1056_v8  ;;  %v1055_v17 = vld [vmem:[%s1450_s5 + $0xa8] sm:$0xff]   ;;  %v877_v21 = vunpack.c.l.bf16 %v1056_v8  ;;  %s668_s7 = sshll.u32 %s215_s6, 4  ;;  %s670_s8 = sshll.u32 %s666_s29, 4  ;;  %s669_s7 = int_to_ptr.vmem [resolvable:$true] %s668_s7  ;;  %s671_s8 = int_to_ptr.hbm [resolvable:$true] %s670_s8 }
  0x2d   : > { %v850_v6 = vunpack.c.h.bf16 %v1049_v2  ;;  %v849_v11 = vunpack.c.l.bf16 %v1049_v2  ;;  %v1065_v12 = vld [vmem:[%s1450_s5 + $0xf8] sm:$0xff]   ;;  %486 = vmatpush.msra.mxu0 %v818_v3  ;;  %v846_v15 = vunpack.c.h.bf16 %v1048_v9  ;;  %v1064_v19 = vld [vmem:[%s1450_s5 + $0xf0] sm:$0xff]   ;;  %v1047_v22 = vld [vmem:[%s1450_s5 + $0x68] sm:$0xff]   ;;  %v845_v24 = vunpack.c.l.bf16 %v1048_v9  ;;  %s654_s15 = scalar_lea.sflag [#allocation5], %s1446_s17  ;;  %s1248_s12 = sshra.s32 %s671_s8, 4  ;;  %s1249_s12 = int_to_ptr.hbm [resolvable:$true] %s1248_s12 }
  0x2e   : > { %526 = vmatpush.msra.mxu2 %v882_v4  ;;  %v914_v18 = vunpack.c.h.bf16 %v1065_v12  ;;  %v913_v23 = vunpack.c.l.bf16 %v1065_v12  ;;  %v910_v25 = vunpack.c.h.bf16 %v1064_v19  ;;  %v810_v26 = vunpack.c.h.bf16 %v1039_v16  ;;  %v1063_v28 = vld [vmem:[%s1450_s5 + $0xe8] sm:$0xff]   ;;  %v1038_v30 = vld [vmem:[%s1450_s5 + $0x20] sm:$0xff]   ;;  %v1037_v42 = vld [vmem:[%s1450_s5 + $0x18] sm:$0xff]   ;;  %s1250_s16 = scalar_lea.hbm %s1249_s12, 8  ;;  %s1254_s25 = scalar_lea.hbm %s1564_s2, 16 }
  0x2f   : > { %506 = vmatpush.msra.mxu1 %v850_v6  ;;  %487 = vmatpush.msra.mxu0 %v817_v5  ;;  %v874_v27 = vunpack.c.h.bf16 %v1055_v17  ;;  %v842_v29 = vunpack.c.h.bf16 %v1047_v22  ;;  %v1054_v31 = vld [vmem:[%s1450_s5 + $0xa0] sm:$0xff]   ;;  %v909_v32 = vunpack.c.l.bf16 %v1064_v19  ;;  %v809_v33 = vunpack.c.l.bf16 %v1039_v16  ;;  %v1053_v43 = vld [vmem:[%s1450_s5 + $0x98] sm:$0xff]   ;;  %v1036_v54 = vld [vmem:[%s1450_s5 + $0x10] sm:$0xff]   ;;  %p1251_p3 = scmp.ne.s32.totalorder %s1249_s12, %s1250_s16  ;;  %p1255_p11 = scmp.lt.s32.totalorder %s1249_s12, %s1564_s2 }
  0x30   : > { %527 = vmatpush.msra.mxu2 %v881_v10  ;;  %546 = vmatpush.msra.mxu3 %v914_v18  ;;  %v873_v34 = vunpack.c.l.bf16 %v1055_v17  ;;  %v1046_v35 = vld [vmem:[%s1450_s5 + $0x60] sm:$0xff]   ;;  %v841_v36 = vunpack.c.l.bf16 %v1047_v22  ;;  %v906_v37 = vunpack.c.h.bf16 %v1063_v28  ;;  %v806_v38 = vunpack.c.h.bf16 %v1038_v30  ;;  %v1045_v47 = vld [vmem:[%s1450_s5 + $0x58] sm:$0xff]   ;;  %v1052_v55 = vld [vmem:[%s1450_s5 + $0x90] sm:$0xff]   ;;  %p1256_p12 = scmp.lt.s32.totalorder %s1254_s25, %s1250_s16 }
  0x31   : > { %507 = vmatpush.msra.mxu1 %v849_v11  ;;  %488 = vmatpush.msra.mxu0 %v814_v13  ;;  %v870_v39 = vunpack.c.h.bf16 %v1054_v31  ;;  %v1062_v40 = vld [vmem:[%s1450_s5 + $0xe0] sm:$0xff]   ;;  %v838_v41 = vunpack.c.h.bf16 %v1046_v35  ;;  %v905_v44 = vunpack.c.l.bf16 %v1063_v28  ;;  %v805_v45 = vunpack.c.l.bf16 %v1038_v30  ;;  %v1061_v52 = vld [vmem:[%s1450_s5 + $0xd8] sm:$0xff]   ;;  %v1044_v59 = vld [vmem:[%s1450_s5 + $0x50] sm:$0xff]   ;;  %p1252_p5 = pnand %p1251_p3, %p1393_p8 }
  0x32   : > { %528 = vmatpush.msra.mxu2 %v878_v14  ;;  %547 = vmatpush.msra.mxu3 %v913_v23  ;;  %v869_v46 = vunpack.c.l.bf16 %v1054_v31  ;;  %v837_v48 = vunpack.c.l.bf16 %v1046_v35  ;;  %v902_v49 = vunpack.c.h.bf16 %v1062_v40  ;;  %v802_v50 = vunpack.c.h.bf16 %v1037_v42  ;;  %v1060_v0 = vld [vmem:[%s1450_s5 + $0xd0] sm:$0xff]   ;;  %v1035_v2 = vld [vmem:[%s1450_s5 + $0x8] sm:$0xff]   ;;  %v788_v14 = vld [vmem:[%s1450_s5] sm:$0xff]   ;;  %p1257_p0 = por %p1256_p12, %p1255_p11 }
  0x33   : > { %508 = vmatpush.msra.mxu1 %v846_v15  ;;  %489 = vmatpush.msra.mxu0 %v813_v20  ;;  %v866_v51 = vunpack.c.h.bf16 %v1053_v43  ;;  %v834_v53 = vunpack.c.h.bf16 %v1045_v47  ;;  %v901_v56 = vunpack.c.l.bf16 %v1062_v40  ;;  %v801_v57 = vunpack.c.l.bf16 %v1037_v42  ;;  %v1051_v3 = vld [vmem:[%s1450_s5 + $0x88] sm:$0xff]   ;;  %v1050_v15 = vld [vmem:[%s1450_s5 + $0x80] sm:$0xff]   ;;  %v1081_v31 = vld [vmem:[%s1450_s5 + $0x178] sm:$0xff]   ;;  %p1253_p7 = pneg %p1252_p5 }
  0x34   : > { %529 = vmatpush.msra.mxu2 %v877_v21  ;;  %548 = vmatpush.msra.mxu3 %v910_v25  ;;  %v865_v58 = vunpack.c.l.bf16 %v1053_v43  ;;  %v833_v60 = vunpack.c.l.bf16 %v1045_v47  ;;  %v898_v61 = vunpack.c.h.bf16 %v1061_v52  ;;  %v798_v62 = vunpack.c.h.bf16 %v1036_v54  ;;  %v1043_v7 = vld [vmem:[%s1450_s5 + $0x48] sm:$0xff]   ;;  %v1042_v19 = vld [vmem:[%s1450_s5 + $0x40] sm:$0xff]   ;;  %v1089_v25 = vld [vmem:[%s1450_s5 + $0x1b8] sm:$0xff]  }
  0x35   : > { %509 = vmatpush.msra.mxu1 %v845_v24  ;;  %490 = vmatpush.msra.mxu0 %v810_v26  ;;  %v862_v63 = vunpack.c.h.bf16 %v1052_v55  ;;  %v830_v1 = vunpack.c.h.bf16 %v1044_v59  ;;  %v897_v4 = vunpack.c.l.bf16 %v1061_v52  ;;  %v797_v5 = vunpack.c.l.bf16 %v1036_v54  ;;  %v1059_v12 = vld [vmem:[%s1450_s5 + $0xc8] sm:$0xff]   ;;  %v1073_v24 = vld [vmem:[%s1450_s5 + $0x138] sm:$0xff]   ;;  %v1058_v28 = vld [vmem:[%s1450_s5 + $0xc0] sm:$0xff]   ;;  %p1258_p1 = pnand %p1257_p0, %p1253_p7 }
  0x36   : > { %530 = vmatpush.msra.mxu2 %v874_v27  ;;  %549 = vmatpush.msra.mxu3 %v909_v32  ;;  %v861_v6 = vunpack.c.l.bf16 %v1052_v55  ;;  %v829_v8 = vunpack.c.l.bf16 %v1044_v59  ;;  %v894_v9 = vunpack.c.h.bf16 %v1060_v0  ;;  %v794_v10 = vunpack.c.h.bf16 %v1035_v2  ;;  %v1072_v35 = vld [vmem:[%s1450_s5 + $0x130] sm:$0xff]   ;;  %v1087_v52 = vld [vmem:[%s1450_s5 + $0x1a8] sm:$0xff]  }
  0x37   : > { %510 = vmatpush.msra.mxu1 %v842_v29  ;;  %491 = vmatpush.msra.mxu0 %v809_v33  ;;  %v858_v11 = vunpack.c.h.bf16 %v1051_v3  ;;  %v826_v13 = vunpack.c.h.bf16 %v1043_v7  ;;  %v893_v16 = vunpack.c.l.bf16 %v1060_v0  ;;  %v793_v17 = vunpack.c.l.bf16 %v1035_v2  ;;  %v355_v40 = vld [vmem:[%s1450_s5 + $0x1f0] sm:$0xf]  ;;  %v1079_v54 = vld [vmem:[%s1450_s5 + $0x168] sm:$0xff]   ;;  %v1086_v0 = vld [vmem:[%s1450_s5 + $0x1a0] sm:$0xff]  }
  0x38   : > { %531 = vmatpush.msra.mxu2 %v873_v34  ;;  %550 = vmatpush.msra.mxu3 %v906_v37  ;;  %v857_v18 = vunpack.c.l.bf16 %v1051_v3  ;;  %v825_v20 = vunpack.c.l.bf16 %v1043_v7  ;;  %v890_v21 = vunpack.c.h.bf16 %v1059_v12  ;;  %v790_v22 = vunpack.c.h.bf16 %v788_v14  ;;  %v1080_v42 = vld [vmem:[%s1450_s5 + $0x170] sm:$0xff]   ;;  %v1078_v2 = vld [vmem:[%s1450_s5 + $0x160] sm:$0xff]  }
  0x39   : > { %511 = vmatpush.msra.mxu1 %v841_v36  ;;  %492 = vmatpush.msra.mxu0 %v806_v38  ;;  %v854_v23 = vunpack.c.h.bf16 %v1050_v15  ;;  %v822_v26 = vunpack.c.h.bf16 %v1042_v19  ;;  %v889_v27 = vunpack.c.l.bf16 %v1059_v12  ;;  %v789_v29 = vunpack.c.l.bf16 %v788_v14  ;;  %v1085_v12 = vld [vmem:[%s1450_s5 + $0x198] sm:$0xff]  }
  0x3a   : > { %532 = vmatpush.msra.mxu2 %v870_v39  ;;  %551 = vmatpush.msra.mxu3 %v905_v44  ;;  %v853_v30 = vunpack.c.l.bf16 %v1050_v15  ;;  %v946_v32 = vunpack.c.h.bf16 %v1073_v24  ;;  %v1010_v33 = vunpack.c.h.bf16 %v1089_v25  ;;  %v821_v34 = vunpack.c.l.bf16 %v1042_v19  ;;  %v1088_v39 = vld [vmem:[%s1450_s5 + $0x1b0] sm:$0xff]   ;;  %v1077_v14 = vld [vmem:[%s1450_s5 + $0x158] sm:$0xff]  }
  0x3b   : > { %512 = vmatpush.msra.mxu1 %v838_v41  ;;  %493 = vmatpush.msra.mxu0 %v805_v45  ;;  %v886_v36 = vunpack.c.h.bf16 %v1058_v28  ;;  %v945_v37 = vunpack.c.l.bf16 %v1073_v24  ;;  %v978_v38 = vunpack.c.h.bf16 %v1081_v31  ;;  %v1009_v41 = vunpack.c.l.bf16 %v1089_v25  ;;  %v1084_v24 = vld [vmem:[%s1450_s5 + $0x190] sm:$0xff]  }
  0x3c   : > { %533 = vmatpush.msra.mxu2 %v869_v46  ;;  %552 = vmatpush.msra.mxu3 %v902_v49  ;;  %v885_v43 = vunpack.c.l.bf16 %v1058_v28  ;;  %v942_v44 = vunpack.c.h.bf16 %v1072_v35  ;;  %v977_v45 = vunpack.c.l.bf16 %v1081_v31  ;;  %v1095_v46 = vld [vmem:[%s1450_s5 + $0x1e8] sm:$0xff]   ;;  %v1006_v47 = vunpack.c.h.bf16 %v1088_v39 }
  0x3d   : > { %513 = vmatpush.msra.mxu1 %v837_v48  ;;  %494 = vmatpush.msra.mxu0 %v802_v50  ;;  %v1071_v48 = vld [vmem:[%s1450_s5 + $0x128] sm:$0xff]   ;;  %v481_v49 = vunpack.c.l.bf16 %v355_v40  ;;  %v941_v50 = vunpack.c.l.bf16 %v1072_v35  ;;  %v1034_v55 = vunpack.c.h.bf16 %v1095_v46  ;;  %v1002_v59 = vunpack.c.h.bf16 %v1087_v52  ;;  %v225_v35 = vld [vmem:[#allocation3 + $0x10] sm:$0xff] }
  0x3e   : > { %534 = vmatpush.msra.mxu2 %v866_v51  ;;  %553 = vmatpush.msra.mxu3 %v901_v56  ;;  %v974_v51 = vunpack.c.h.bf16 %v1080_v42  ;;  %v938_v56 = vunpack.c.h.bf16 %v1071_v48  ;;  %v998_v7 = vunpack.c.h.bf16 %v1086_v0  ;;  %v994_v19 = vunpack.c.h.bf16 %v1085_v12  ;;  %v1067_v31 = vld [vmem:[%s1450_s5 + $0x108] sm:$0xff]  }
  0x3f   : > { %514 = vmatpush.msra.mxu1 %v834_v53  ;;  %495 = vmatpush.msra.mxu0 %v801_v57  ;;  %v1005_v53 = vunpack.c.l.bf16 %v1088_v39  ;;  %v973_v57 = vunpack.c.l.bf16 %v1080_v42  ;;  %v993_v25 = vunpack.c.l.bf16 %v1085_v12  ;;  %v961_v28 = vunpack.c.l.bf16 %v1077_v14  ;;  %v1075_v39 = vld [vmem:[%s1450_s5 + $0x148] sm:$0xff]  }
  0x40   : > { %535 = vmatpush.msra.mxu2 %v865_v58  ;;  %554 = vmatpush.msra.mxu3 %v898_v61  ;;  %v1094_v58 = vld [vmem:[%s1450_s5 + $0x1e0] sm:$0xff]   ;;  %v1033_v61 = vunpack.c.l.bf16 %v1095_v46  ;;  %v224_v46 = vld [vmem:[#allocation3 + $0x8] sm:$0xff] }
  0x41   : > { %515 = vmatpush.msra.mxu1 %v833_v60  ;;  %496 = vmatpush.msra.mxu0 %v798_v62  ;;  %v1070_v60 = vld [vmem:[%s1450_s5 + $0x120] sm:$0xff]   ;;  %v937_v62 = vunpack.c.l.bf16 %v1071_v48  ;;  %v1030_v3 = vunpack.c.h.bf16 %v1094_v58  ;;  %v954_v48 = vunpack.c.h.bf16 %v1075_v39 }
  0x42   : > { %536 = vmatpush.msra.mxu2 %v862_v63  ;;  %555 = vmatpush.msra.mxu3 %v897_v4  ;;  %v970_v63 = vunpack.c.h.bf16 %v1079_v54  ;;  %v934_v4 = vunpack.c.h.bf16 %v1070_v60  ;;  %v226_v40 = vld [vmem:[#allocation3 + $0x18] sm:$0xff] }
  0x43   : > { %516 = vmatpush.msra.mxu1 %v830_v1  ;;  %497 = vmatpush.msra.mxu0 %v797_v5  ;;  %v1001_v1 = vunpack.c.l.bf16 %v1087_v52  ;;  %v969_v5 = vunpack.c.l.bf16 %v1079_v54  ;;  %v1074_v52 = vld [vmem:[%s1450_s5 + $0x140] sm:$0xff]   ;;  %v953_v54 = vunpack.c.l.bf16 %v1075_v39 }
  0x44   : > { %537 = vmatpush.msra.mxu2 %v861_v6  ;;  %556 = vmatpush.msra.mxu3 %v894_v9  ;;  %v1093_v6 = vld [vmem:[%s1450_s5 + $0x1d8] sm:$0xff]   ;;  %v1029_v9 = vunpack.c.l.bf16 %v1094_v58 }
  0x45   : > { %517 = vmatpush.msra.mxu1 %v829_v8  ;;  %498 = vmatpush.msra.mxu0 %v794_v10  ;;  %v1069_v8 = vld [vmem:[%s1450_s5 + $0x118] sm:$0xff]   ;;  %v933_v10 = vunpack.c.l.bf16 %v1070_v60  ;;  %v1026_v15 = vunpack.c.h.bf16 %v1093_v6 }
  0x46   : > { %538 = vmatpush.msra.mxu2 %v858_v11  ;;  %557 = vmatpush.msra.mxu3 %v893_v16  ;;  %v966_v11 = vunpack.c.h.bf16 %v1078_v2  ;;  %v930_v16 = vunpack.c.h.bf16 %v1069_v8 }
  0x47   : > { %518 = vmatpush.msra.mxu1 %v826_v13  ;;  %499 = vmatpush.msra.mxu0 %v793_v17  ;;  %v997_v13 = vunpack.c.l.bf16 %v1086_v0  ;;  %v965_v17 = vunpack.c.l.bf16 %v1078_v2  ;;  %v949_v0 = vunpack.c.l.bf16 %v1074_v52  ;;  %v228_v2 = vld [vmem:[#allocation3 + $0x28] sm:$0xff] }
  0x48   : > { %539 = vmatpush.msra.mxu2 %v857_v18  ;;  %558 = vmatpush.msra.mxu3 %v890_v21  ;;  %v1508_v18 = vld [vmem:[%s1450_s5 + $0x1d0] sm:$0xff]   ;;  %v1025_v21 = vunpack.c.l.bf16 %v1093_v6 }
  0x49   : > { %519 = vmatpush.msra.mxu1 %v825_v20  ;;  %500 = vmatpush.msra.mxu0 %v790_v22  ;;  %v1068_v20 = vld [vmem:[%s1450_s5 + $0x110] sm:$0xff]   ;;  %v929_v22 = vunpack.c.l.bf16 %v1069_v8 }
  0x4a   : > { %540 = vmatpush.msra.mxu2 %v854_v23  ;;  %559 = vmatpush.msra.mxu3 %v889_v27  ;;  %v962_v23 = vunpack.c.h.bf16 %v1077_v14  ;;  %v926_v27 = vunpack.c.h.bf16 %v1068_v20 }
  0x4b   : > { %520 = vmatpush.msra.mxu1 %v822_v26  ;;  %501 = vmatpush.msra.mxu0 %v789_v29  ;;  %v1022_v26 = vunpack.c.h.bf16 %v1508_v18  ;;  %v1076_v29 = vld [vmem:[%s1450_s5 + $0x150] sm:$0xff]  }
  0x4c   : > { %541 = vmatpush.msra.mxu2 %v853_v30  ;;  %560 = vmatpush.msra.mxu3 %v886_v36  ;;  %v990_v30 = vunpack.c.h.bf16 %v1084_v24  ;;  %v958_v36 = vunpack.c.h.bf16 %v1076_v29 }
  0x4d   : > { %566 = vmatpush.msrb.mxu0 %v946_v32  ;;  %521 = vmatpush.msra.mxu1 %v821_v34  ;;  %v925_v32 = vunpack.c.l.bf16 %v1068_v20  ;;  %v1083_v34 = vld [vmem:[%s1450_s5 + $0x188] sm:$0xff]  }
  0x4e   : > { %606 = vmatpush.msrb.mxu2 %v1010_v33  ;;  %561 = vmatpush.msra.mxu3 %v885_v43  ;;  %v223_v33 = vld [vmem:[#allocation3] sm:$0xff]  ;;  %v986_v42 = vunpack.c.h.bf16 %v1083_v34 }
  0x4f   : > { %567 = vmatpush.msrb.mxu0 %v945_v37  ;;  %586 = vmatpush.msrb.mxu1 %v978_v38  ;;  %v989_v37 = vunpack.c.l.bf16 %v1084_v24  ;;  %v922_v38 = vunpack.c.h.bf16 %v1067_v31  ;;  %v1091_v43 = vld [vmem:[%s1450_s5 + $0x1c8] sm:$0xff]  }
  0x50   : > { %607 = vmatpush.msrb.mxu2 %v1009_v41  ;;  %629 = vmatpush.msrb.mxu3 %v481_v49  ;;  %v957_v41 = vunpack.c.l.bf16 %v1076_v29  ;;  %v1082_v49 = vld [vmem:[%s1450_s5 + $0x180] sm:$0xff]  }
  0x51   : > { %568 = vmatpush.msrb.mxu0 %v942_v44  ;;  %587 = vmatpush.msrb.mxu1 %v977_v45  ;;  %v1021_v44 = vunpack.c.l.bf16 %v1508_v18  ;;  %v1066_v45 = vld [vmem:[%s1450_s5 + $0x100] sm:$0xff]   ;;  %v981_v60 = vunpack.c.l.bf16 %v1082_v49 }
  0x52   : > { %608 = vmatpush.msrb.mxu2 %v1006_v47  ;;  %630 = vmatpush.msrb.mxu3 %v1034_v55  ;;  %v921_v47 = vunpack.c.l.bf16 %v1067_v31  ;;  %v1090_v55 = vld [vmem:[%s1450_s5 + $0x1c0] sm:$0xff]   ;;  %v917_v58 = vunpack.c.l.bf16 %v1066_v45 }
  0x53   : > { %569 = vmatpush.msrb.mxu0 %v941_v50  ;;  %588 = vmatpush.msrb.mxu1 %v974_v51  ;;  %v985_v50 = vunpack.c.l.bf16 %v1083_v34  ;;  %v1018_v51 = vunpack.c.h.bf16 %v1091_v43 }
  0x54   : > { %609 = vmatpush.msrb.mxu2 %v1005_v53  ;;  %631 = vmatpush.msrb.mxu3 %v1033_v61  ;;  %v918_v53 = vunpack.c.h.bf16 %v1066_v45  ;;  %v1014_v61 = vunpack.c.h.bf16 %v1090_v55 }
  0x55   : > { %570 = vmatpush.msrb.mxu0 %v938_v56  ;;  %589 = vmatpush.msrb.mxu1 %v973_v57  ;;  %v982_v56 = vunpack.c.h.bf16 %v1082_v49  ;;  %v1017_v57 = vunpack.c.l.bf16 %v1091_v43 }
  0x56   : > { %610 = vmatpush.msrb.mxu2 %v1002_v59  ;;  %632 = vmatpush.msrb.mxu3 %v1030_v3  ;;  %v950_v59 = vunpack.c.h.bf16 %v1074_v52  ;;  %v230_v3 = vld [vmem:[#allocation3 + $0x38] sm:$0xff] }
  0x57   : > { %571 = vmatpush.msrb.mxu0 %v937_v62  ;;  %590 = vmatpush.msrb.mxu1 %v970_v63  ;;  %v227_v62 = vld [vmem:[#allocation3 + $0x20] sm:$0xff]  ;;  %v229_v63 = vld [vmem:[#allocation3 + $0x30] sm:$0xff] }
  0x58   : > { %611 = vmatpush.msrb.mxu2 %v1001_v1  ;;  %633 = vmatpush.msrb.mxu3 %v1029_v9  ;;  %v1013_v1 = vunpack.c.l.bf16 %v1090_v55 }
  0x59   : > { %572 = vmatpush.msrb.mxu0 %v934_v4  ;;  %591 = vmatpush.msrb.mxu1 %v969_v5 }
  0x5a   : > { %612 = vmatpush.msrb.mxu2 %v998_v7  ;;  %634 = vmatpush.msrb.mxu3 %v1026_v15 }
  0x5b   : > { %573 = vmatpush.msrb.mxu0 %v933_v10  ;;  %592 = vmatpush.msrb.mxu1 %v966_v11 }
  0x5c   : > { %613 = vmatpush.msrb.mxu2 %v997_v13  ;;  %635 = vmatpush.msrb.mxu3 %v1025_v21 }
  0x5d   : > { %574 = vmatpush.msrb.mxu0 %v930_v16  ;;  %593 = vmatpush.msrb.mxu1 %v965_v17 }
  0x5e   : > { %614 = vmatpush.msrb.mxu2 %v994_v19  ;;  %636 = vmatpush.msrb.mxu3 %v1022_v26 }
  0x5f   : > { %575 = vmatpush.msrb.mxu0 %v929_v22  ;;  %594 = vmatpush.msrb.mxu1 %v962_v23 }
  0x60   : > { %615 = vmatpush.msrb.mxu2 %v993_v25  ;;  %502 = vmatmul.f32.vlgmr.msra.gmra.mxu0 %v223_v33 }
  0x61   : > { %576 = vmatpush.msrb.mxu0 %v926_v27  ;;  %595 = vmatpush.msrb.mxu1 %v961_v28 }
  0x62   : > { %616 = vmatpush.msrb.mxu2 %v990_v30  ;;  %562 = vmatmul.f32.vlgmr.msra.gmra.mxu3 %v226_v40 }
  0x63   : > { %542 = vmatmul.f32.vlgmr.msra.gmra.mxu2 %v225_v35  ;;  %577 = vmatpush.msrb.mxu0 %v925_v32 }
  0x64   : > { %596 = vmatpush.msrb.mxu1 %v958_v36  ;;  %617 = vmatpush.msrb.mxu2 %v989_v37 }
  0x65   : > { %578 = vmatpush.msrb.mxu0 %v922_v38  ;;  %637 = vmatpush.msrb.mxu3 %v1021_v44 }
  0x66   : > { %597 = vmatpush.msrb.mxu1 %v957_v41  ;;  %618 = vmatpush.msrb.mxu2 %v986_v42 }
  0x67   : > { %522 = vmatmul.f32.vlgmr.msra.gmra.mxu1 %v224_v46  ;;  %579 = vmatpush.msrb.mxu0 %v921_v47 }
  0x68   : > { %598 = vmatpush.msrb.mxu1 %v954_v48  ;;  %619 = vmatpush.msrb.mxu2 %v985_v50 }
  0x69   : > { %638 = vmatpush.msrb.mxu3 %v1018_v51  ;;  %580 = vmatpush.msrb.mxu0 %v918_v53 }
  0x6a   : > { %599 = vmatpush.msrb.mxu1 %v953_v54  ;;  %620 = vmatpush.msrb.mxu2 %v982_v56 }
  0x6b   : > { %639 = vmatpush.msrb.mxu3 %v1017_v57  ;;  %581 = vmatpush.msrb.mxu0 %v917_v58 }
  0x6c   : > { %600 = vmatpush.msrb.mxu1 %v950_v59  ;;  %621 = vmatpush.msrb.mxu2 %v981_v60 }
  0x6d   : > { %640 = vmatpush.msrb.mxu3 %v1014_v61  ;;  %582 = vmatmul.f32.vlgmr.msrb.gmra.mxu0 %v227_v62 }
  0x6e   : > { %622 = vmatmul.f32.vlgmr.msrb.gmra.mxu2 %v229_v63  ;;  %601 = vmatpush.msrb.mxu1 %v949_v0 }
  0x6f   : > { %641 = vmatpush.msrb.mxu3 %v1013_v1  ;;  %602 = vmatmul.f32.vlgmr.msrb.gmra.mxu1 %v228_v2 }
  0x70   : > { %782 = vmatmul.msk.f32.vlgmr.msrb.gmra.mxu3 %vm482_vm0, %v230_v3 }
  0xdd   : > { %v503_v4 = vpop.f32.mrf.mxu0 }
  0xe4   : > { %v523_v5 = vpop.f32.mrf.mxu1 }
  0xe5   : > { %v524_v6 = vadd.f32 %v523_v5, %v503_v4  ;;  %v563_v9 = vpop.f32.mrf.mxu3 }
  0xe6   : > { %v543_v7 = vpop.f32.mrf.mxu2 }
  0xe7   : > { %v544_v8 = vadd.f32 %v543_v7, %v524_v6 }
  0xe9   : > { %v564_v10 = vadd.f32 %v563_v9, %v544_v8 }
  0xea   : > { %v583_v11 = vpop.f32.mrf.mxu0 }
  0xeb   : > { %v584_v12 = vadd.f32 %v583_v11, %v564_v10 }
  0xec   : > { %v603_v13 = vpop.f32.mrf.mxu1 }
  0xed   : > { %v604_v14 = vadd.f32 %v603_v13, %v584_v12 }
  0xf1   : > { %v623_v15 = vpop.f32.mrf.mxu2 }
  0xf2   : > { %v624_v16 = vadd.f32 %v623_v15, %v604_v14 }
  0xf3   : > { %v643_v17 = vpop.f32.mrf.mxu3 }
  0xf4   : > { %v644_v18 = vadd.f32 %v643_v17, %v624_v16 }
  0xf6   : > { %652 = vst [vmem:[%s215_s6] sm:$0xff] %v644_v18 }
  0xf7   : > { %1261 = shalt.err (!%p1258_p1)
}
  0xf8   : > { %1104 = dma.vmem_to_hbm [thread:$0]  (%p1393_p8), %s669_s7, 128, %s671_s8, %s654_s15  }
  0xf9 PF: > { %s682_s17 = sand.u32 1, %s1300_s9   ;;  %p1115_p2 = pnand %p777_p13, %p1397_p9 }
  0xfa   : > { %s683_s3 = scalar_lea.sflag [#allocation5], %s682_s17 }
  0xfb   : > { %p1116_p4 = pneg %p1115_p2 }
  0xfd   : > { %1295 = dma.done.wait (%p1116_p4), %s683_s3, 128  }
  0xfe   : > { %1297 = vsyncadd (%p1116_p4), %s683_s3, 4294967168  ;;  %s19_s14 = sadd.s32 1, %s1320_s14   ;;  %s1574_s9 = smov %s1304_s10 }
  0xff   : > { %p16_p6 = scmp.ge.s32.totalorder %s19_s14, 4   ;;  %s1575_s10 = smov %s1308_s11 }
 0x100   : > { %s1576_s11 = smov %s1435_s23  ;;  %s1577_s12 = smov %s1316_s13 }
 0x101   : > { %s1578_s13 = smov %s1580_s30  ;;  %18 = sbr.rel (!%p16_p6) target bundleno = 9 (0x9), region = 87 }
 0x106   :  { %689 = vsyncpa [#allocation4], 1 }
 0x107   :  { %691 = vsyncpa [#allocation4 + $0x1], 1 }
 0x108   :  { %692 = vsyncpa [#allocation7], 1 }
 0x109   :  { %694 = vsyncpa [#allocation7 + $0x1], 1 }
 0x10a   :  { %695 = vsyncpa [#allocation5], 1 }
 0x10b   :  { %697 = vsyncpa [#allocation5 + $0x1], 1 }

</bundles_post_ra>
